<compile_context>
chip_gen: v7x
topology: tpu7x:2x2x1
jax: 0.10.0
libtpu: 0.0.40
codegen_flags: <defaults>
</compile_context>

<pallas_src>
import functools
import math

import jax
import jax.numpy as jnp
from jax.experimental import pallas as pl
from jax.experimental.pallas import tpu as pltpu


def _embed_ln_kernel(x_ref, w_ref, b_ref, g_ref, bb_ref, o_ref, *, eps):
    """Fused patch projection + bias + LayerNorm for one tile of image row-bands.

    x_ref : (nb, P, Wp, P*C)  nb image row-bands, compute dtype (bf16/f32)
    w_ref : (P, P*C, D)       resident projection weights, one slab per kernel row
    b_ref, g_ref, bb_ref : (1, D) f32 conv-bias / LN-gamma / LN-beta
    o_ref : (nb*Wp, D)        f32 normalized patch embeddings
    """
    nb, patch, wp, pc = x_ref.shape
    rows = nb * wp
    # P accumulating sub-matmuls (one per kernel row).  Each lhs slice is contiguous in
    # (patch-col, channel) feature order, so no patch transpose ever touches HBM.
    acc = jnp.dot(x_ref[:, 0, :, :].reshape(rows, pc), w_ref[0],
                  preferred_element_type=jnp.float32)
    for r in range(1, patch):
        acc = acc + jnp.dot(x_ref[:, r, :, :].reshape(rows, pc), w_ref[r],
                            preferred_element_type=jnp.float32)
    y = acc + b_ref[...]
    # LayerNorm over the true embed dim (no padded columns anywhere), all in f32.
    mean = jnp.mean(y, axis=-1, keepdims=True)
    cen = y - mean
    var = jnp.mean(cen * cen, axis=-1, keepdims=True)
    y_n = cen * jax.lax.rsqrt(var + eps)
    o_ref[...] = (y_n * g_ref[...] + bb_ref[...]).astype(o_ref.dtype)


def _pick_bands_per_tile(num_bands, wp, target_rows):
    """Bands per grid tile: a divisor of num_bands (zero tail waste) whose row count
    nb*wp is a multiple of 8 (sublane rule) or covers all rows (full-dim escape),
    preferring >=2 grid tiles so the parallel axis can use both v7x TensorCores."""
    divisors = [d for d in range(1, num_bands + 1) if num_bands % d == 0]
    valid = [d for d in divisors if (d * wp) % 8 == 0 or d == num_bands]
    cands = [d for d in valid if d * wp <= target_rows and d < num_bands]
    if cands:
        return max(cands)
    return min(valid)


def _fused_patch_embed(x4, w_mat, bias, ln_w, ln_b, *, bands_per_tile,
                       out_dtype=jnp.float32, eps=1e-5):
    """x4: (G, P, Wp, P*C) row-bands; w_mat: (P, P*C, D); bias/ln_*: (1, D) f32.
    Returns (G*Wp, D) LayerNorm'd patch embeddings."""
    G, P, Wp, pc = x4.shape
    D = w_mat.shape[-1]
    M = G * Wp
    nb = bands_per_tile
    num_tiles = G // nb
    rows = nb * Wp

    flops = 2 * M * (P * pc) * D
    bytes_accessed = (x4.size * x4.dtype.itemsize
                      + w_mat.size * w_mat.dtype.itemsize
                      + M * D * jnp.dtype(out_dtype).itemsize)

    kernel = functools.partial(_embed_ln_kernel, eps=eps)
    return pl.pallas_call(
        kernel,
        out_shape=jax.ShapeDtypeStruct((M, D), out_dtype),
        grid=(num_tiles,),
        in_specs=[
            # streamed image row-bands (only operand that changes per grid step)
            pl.BlockSpec((nb, P, Wp, pc), lambda i: (i, 0, 0, 0)),
            # VMEM-resident weights / bias / LN params (constant index_map)
            pl.BlockSpec((P, pc, D), lambda i: (0, 0, 0)),
            pl.BlockSpec((1, D), lambda i: (0, 0)),
            pl.BlockSpec((1, D), lambda i: (0, 0)),
            pl.BlockSpec((1, D), lambda i: (0, 0)),
        ],
        out_specs=pl.BlockSpec((rows, D), lambda i: (i, 0)),
        compiler_params=pltpu.CompilerParams(
            dimension_semantics=("parallel",),   # rows independent -> v7x megacore
        ),
        cost_estimate=pl.CostEstimate(flops=flops, transcendentals=M,
                                      bytes_accessed=bytes_accessed),
    )(x4, w_mat, bias, ln_w, ln_b)


def _position_grid(hp, wp):
    xs = jax.lax.broadcasted_iota(jnp.float32, (hp, wp), 1)   # column index
    ys = jax.lax.broadcasted_iota(jnp.float32, (hp, wp), 0)   # row index
    return jnp.stack([xs, ys], axis=-1).reshape(-1, 2)


class MultiScalePatchEmbeddingPallas:
    """JAX/Pallas re-implementation of the PyTorch MultiScalePatchEmbedding."""

    def __init__(self, img_size, patch_sizes, in_chans, embed_dim, key,
                 compute_dtype=jnp.bfloat16, block_rows=512):
        self.img_size = img_size
        self.patch_sizes = patch_sizes
        self.in_chans = in_chans
        self.embed_dim = embed_dim
        self.compute_dtype = compute_dtype
        # Target rows per tile: with bf16 operands this keeps double-buffered
        # (rows, K) + (rows, D) tiles + resident (P, P*C, D) weights far below
        # v5e's 16 MiB scoped VMEM and v7x's 32 MiB scoped VMEM.
        self.block_rows = block_rows

        self.conv_weights = []   # (D, C, P, P) original layout (reference path)
        self.conv_biases = []    # (D,)
        self.w_mats = []         # (P, P*C, D) kernel layout, compute dtype
        self.biases2 = []        # (1, D) f32
        self.pos_templates = {}  # P -> (Hp*Wp, 2) f32, x-independent

        for P in patch_sizes:
            key, sub = jax.random.split(key)
            fan_in = in_chans * P * P
            fan_out = embed_dim * P * P
            bound = math.sqrt(6.0 / (fan_in + fan_out))   # xavier_uniform_, gain=1
            w = jax.random.uniform(sub, (embed_dim, in_chans, P, P),
                                   minval=-bound, maxval=bound, dtype=jnp.float32)
            b = jnp.zeros((embed_dim,), jnp.float32)
            self.conv_weights.append(w)
            self.conv_biases.append(b)
            # (D, C, Pr, Pc) -> (Pr, Pc, C, D) -> (Pr, Pc*C, D): row-r slab maps the
            # (patch-col, channel)-ordered features of kernel row r to embed dim.
            w_mat = jnp.transpose(w, (2, 3, 1, 0)).reshape(P, P * in_chans, embed_dim)
            self.w_mats.append(w_mat.astype(compute_dtype))
            self.biases2.append(b.reshape(1, embed_dim))
            hp = img_size // P
            self.pos_templates[P] = _position_grid(hp, hp)

        # Shared LayerNorm(embed_dim): weight=1, bias=0 (PyTorch default init).
        self.ln_w = jnp.ones((embed_dim,), jnp.float32)
        self.ln_b = jnp.zeros((embed_dim,), jnp.float32)
        self.ln_w2 = self.ln_w.reshape(1, embed_dim)
        self.ln_b2 = self.ln_b.reshape(1, embed_dim)

    def __call__(self, x):
        # x: (B, C, H, W), NCHW like PyTorch.
        B, C, H, W = x.shape
        D = self.embed_dim
        # One NCHW -> NHWC conversion per forward (shared by every scale); after this
        # every per-scale band view is a free contiguous reshape.
        # TODO(synk): fold the channel gather into the kernel to drop this copy too.
        x_nhwc = jnp.transpose(x, (0, 2, 3, 1)).astype(self.compute_dtype)

        patch_embeddings = []
        positions = []
        for w_mat, b2, P in zip(self.w_mats, self.biases2, self.patch_sizes):
            Hp, Wp = H // P, W // P
            N = Hp * Wp
            pc = P * C
            x_use = x_nhwc if (Hp * P == H and Wp * P == W) \
                else x_nhwc[:, :Hp * P, :Wp * P, :]
            # Free (contiguous) view: one "band" = P image rows of one (b, hp).
            x4 = x_use.reshape(B * Hp, P, Wp, pc)
            nb = _pick_bands_per_tile(B * Hp, Wp, self.block_rows)
            out = _fused_patch_embed(x4, w_mat, b2, self.ln_w2, self.ln_b2,
                                     bands_per_tile=nb, out_dtype=jnp.float32)
            patch_embeddings.append(out.reshape(B, N, D))

            if H == self.img_size and W == self.img_size:
                pos = self.pos_templates[P]
            else:
                pos = _position_grid(Hp, Wp)
            pos = jnp.broadcast_to(pos.astype(x.dtype)[None], (B, N, 2))
            positions.append(pos)
        return patch_embeddings, positions


def _reference(module, x):
    """Pure-JAX reference (conv + LN), mirrors the PyTorch module."""
    outs = []
    for w, b, P in zip(module.conv_weights, module.conv_biases, module.patch_sizes):
        y = jax.lax.conv_general_dilated(
            x, w, window_strides=(P, P), padding="VALID",
            dimension_numbers=("NCHW", "OIHW", "NCHW"))
        y = y + b[None, :, None, None]
        B, D, Hp, Wp = y.shape
        y = y.reshape(B, D, Hp * Wp).transpose(0, 2, 1)
        mean = jnp.mean(y, axis=-1, keepdims=True)
        var = jnp.mean((y - mean) ** 2, axis=-1, keepdims=True)
        y = (y - mean) / jnp.sqrt(var + 1e-5)
        y = y * module.ln_w + module.ln_b
        outs.append(y)
    return outs


if __name__ == "__main__":
    key = jax.random.PRNGKey(0)
    key, xkey = jax.random.split(key)

    B, C, HW = 2, 4, 16
    patch_sizes = [4, 8]
    embed_dim = 32

    x = jax.random.normal(xkey, (B, C, HW, HW), dtype=jnp.float32)

    # Default (bf16 streaming) path — loose tolerance (operand quantization only;
    # matmul accumulation and LN are f32 inside the kernel).
    mod_bf16 = MultiScalePatchEmbeddingPallas(HW, patch_sizes, C, embed_dim, key)
    emb_bf16, pos_bf16 = jax.jit(lambda inp: mod_bf16(inp))(x)
    emb_bf16 = [jax.block_until_ready(e) for e in emb_bf16]
    pos_bf16 = [jax.block_until_ready(p) for p in pos_bf16]

    refs = [jax.block_until_ready(r) for r in _reference(mod_bf16, x)]
    for e, r in zip(emb_bf16, refs):
        assert e.shape == r.shape
        err = float(jnp.max(jnp.abs(e - r)))
        assert err < 1.5e-1, f"bf16 Pallas output mismatch vs reference: {err}"

    # f32 path — tight tolerance against the conv reference (same weights: same key).
    mod_f32 = MultiScalePatchEmbeddingPallas(HW, patch_sizes, C, embed_dim, key,
                                             compute_dtype=jnp.float32)
    emb_f32, pos_f32 = jax.jit(lambda inp: mod_f32(inp))(x)
    emb_f32 = [jax.block_until_ready(e) for e in emb_f32]
    pos_f32 = [jax.block_until_ready(p) for p in pos_f32]
    for e, r in zip(emb_f32, refs):
        assert e.shape == r.shape
        err = float(jnp.max(jnp.abs(e - r)))
        assert err < 2e-3, f"f32 Pallas output mismatch vs reference: {err}"

    # positions: (B, N, 2), row-major (x=col, y=row), x.dtype — matches PyTorch.
    for p, P in zip(pos_f32, patch_sizes):
        Hp = Wp = HW // P
        N = Hp * Wp
        assert p.shape == (B, N, 2)
        expect_x = jnp.tile(jnp.arange(Wp, dtype=x.dtype), Hp)
        expect_y = jnp.repeat(jnp.arange(Hp, dtype=x.dtype), Wp)
        assert bool(jnp.all(p[0, :, 0] == expect_x))
        assert bool(jnp.all(p[0, :, 1] == expect_y))

    print("KERNEL_OK")
</pallas_src>

<mosaic_0001>
module attributes {stable_mosaic.version = 11 : i64} {
  func.func @_embed_ln_kernel(%arg0: i32, %arg1: memref<4x8x2x32xbf16, #tpu.memory_space<vmem>>, %arg2: memref<8x32x32xbf16, #tpu.memory_space<vmem>>, %arg3: memref<1x32xf32, #tpu.memory_space<vmem>>, %arg4: memref<1x32xf32, #tpu.memory_space<vmem>>, %arg5: memref<1x32xf32, #tpu.memory_space<vmem>>, %arg6: memref<8x32xf32, #tpu.memory_space<vmem>>) attributes {dimension_semantics = [#tpu.dimension_semantics<parallel>], iteration_bounds = array<i64: 1>, scalar_prefetch = 0 : i64, scratch_operands = 0 : i64, tpu.core_type = #tpu.core_type<tc>, window_params = [{transform_indices = @transform_0, window_bounds = array<i64: 4, 8, 2, 32>}, {pipeline_mode = #tpu.pipeline_mode<synchronous>, transform_indices = @transform_1, window_bounds = array<i64: 8, 32, 32>}, {pipeline_mode = #tpu.pipeline_mode<synchronous>, transform_indices = @transform_2, window_bounds = array<i64: 1, 32>}, {pipeline_mode = #tpu.pipeline_mode<synchronous>, transform_indices = @transform_3, window_bounds = array<i64: 1, 32>}, {pipeline_mode = #tpu.pipeline_mode<synchronous>, transform_indices = @transform_4, window_bounds = array<i64: 1, 32>}, {transform_indices = @transform_5, window_bounds = array<i64: 8, 32>}]} {
    %c0 = arith.constant 0 : index
    %c0_0 = arith.constant 0 : index
    %c0_1 = arith.constant 0 : index
    %c0_2 = arith.constant 0 : index
    %0 = vector.load %arg1[%c0, %c0_0, %c0_1, %c0_2] : memref<4x8x2x32xbf16, #tpu.memory_space<vmem>>, vector<4x1x2x32xbf16>
    %1 = vector.shape_cast %0 : vector<4x1x2x32xbf16> to vector<4x2x32xbf16>
    %2 = vector.shape_cast %1 : vector<4x2x32xbf16> to vector<8x32xbf16>
    %c0_3 = arith.constant 0 : index
    %c0_4 = arith.constant 0 : index
    %c0_5 = arith.constant 0 : index
    %3 = vector.load %arg2[%c0_3, %c0_4, %c0_5] : memref<8x32x32xbf16, #tpu.memory_space<vmem>>, vector<1x32x32xbf16>
    %4 = vector.shape_cast %3 : vector<1x32x32xbf16> to vector<32x32xbf16>
    %cst = arith.constant dense<0.000000e+00> : vector<8x32xf32>
    %5 = tpu.matmul %2, %4, %cst {dimension_numbers = #tpu.dot_dimension_numbers<[1], [0], [0], [1], [0, 0, 1, 1], [], []>} : vector<8x32xbf16>, vector<32x32xbf16>, vector<8x32xf32> -> vector<8x32xf32>
    %c0_6 = arith.constant 0 : index
    %c1 = arith.constant 1 : index
    %c0_7 = arith.constant 0 : index
    %c0_8 = arith.constant 0 : index
    %6 = vector.load %arg1[%c0_6, %c1, %c0_7, %c0_8] : memref<4x8x2x32xbf16, #tpu.memory_space<vmem>>, vector<4x1x2x32xbf16>
    %7 = vector.shape_cast %6 : vector<4x1x2x32xbf16> to vector<4x2x32xbf16>
    %8 = vector.shape_cast %7 : vector<4x2x32xbf16> to vector<8x32xbf16>
    %c1_9 = arith.constant 1 : index
    %c0_10 = arith.constant 0 : index
    %c0_11 = arith.constant 0 : index
    %9 = vector.load %arg2[%c1_9, %c0_10, %c0_11] : memref<8x32x32xbf16, #tpu.memory_space<vmem>>, vector<1x32x32xbf16>
    %10 = vector.shape_cast %9 : vector<1x32x32xbf16> to vector<32x32xbf16>
    %cst_12 = arith.constant dense<0.000000e+00> : vector<8x32xf32>
    %11 = tpu.matmul %8, %10, %cst_12 {dimension_numbers = #tpu.dot_dimension_numbers<[1], [0], [0], [1], [0, 0, 1, 1], [], []>} : vector<8x32xbf16>, vector<32x32xbf16>, vector<8x32xf32> -> vector<8x32xf32>
    %12 = arith.addf %5, %11 : vector<8x32xf32>
    %c0_13 = arith.constant 0 : index
    %c2 = arith.constant 2 : index
    %c0_14 = arith.constant 0 : index
    %c0_15 = arith.constant 0 : index
    %13 = vector.load %arg1[%c0_13, %c2, %c0_14, %c0_15] : memref<4x8x2x32xbf16, #tpu.memory_space<vmem>>, vector<4x1x2x32xbf16>
    %14 = vector.shape_cast %13 : vector<4x1x2x32xbf16> to vector<4x2x32xbf16>
    %15 = vector.shape_cast %14 : vector<4x2x32xbf16> to vector<8x32xbf16>
    %c2_16 = arith.constant 2 : index
    %c0_17 = arith.constant 0 : index
    %c0_18 = arith.constant 0 : index
    %16 = vector.load %arg2[%c2_16, %c0_17, %c0_18] : memref<8x32x32xbf16, #tpu.memory_space<vmem>>, vector<1x32x32xbf16>
    %17 = vector.shape_cast %16 : vector<1x32x32xbf16> to vector<32x32xbf16>
    %cst_19 = arith.constant dense<0.000000e+00> : vector<8x32xf32>
    %18 = tpu.matmul %15, %17, %cst_19 {dimension_numbers = #tpu.dot_dimension_numbers<[1], [0], [0], [1], [0, 0, 1, 1], [], []>} : vector<8x32xbf16>, vector<32x32xbf16>, vector<8x32xf32> -> vector<8x32xf32>
    %19 = arith.addf %12, %18 : vector<8x32xf32>
    %c0_20 = arith.constant 0 : index
    %c3 = arith.constant 3 : index
    %c0_21 = arith.constant 0 : index
    %c0_22 = arith.constant 0 : index
    %20 = vector.load %arg1[%c0_20, %c3, %c0_21, %c0_22] : memref<4x8x2x32xbf16, #tpu.memory_space<vmem>>, vector<4x1x2x32xbf16>
    %21 = vector.shape_cast %20 : vector<4x1x2x32xbf16> to vector<4x2x32xbf16>
    %22 = vector.shape_cast %21 : vector<4x2x32xbf16> to vector<8x32xbf16>
    %c3_23 = arith.constant 3 : index
    %c0_24 = arith.constant 0 : index
    %c0_25 = arith.constant 0 : index
    %23 = vector.load %arg2[%c3_23, %c0_24, %c0_25] : memref<8x32x32xbf16, #tpu.memory_space<vmem>>, vector<1x32x32xbf16>
    %24 = vector.shape_cast %23 : vector<1x32x32xbf16> to vector<32x32xbf16>
    %cst_26 = arith.constant dense<0.000000e+00> : vector<8x32xf32>
    %25 = tpu.matmul %22, %24, %cst_26 {dimension_numbers = #tpu.dot_dimension_numbers<[1], [0], [0], [1], [0, 0, 1, 1], [], []>} : vector<8x32xbf16>, vector<32x32xbf16>, vector<8x32xf32> -> vector<8x32xf32>
    %26 = arith.addf %19, %25 : vector<8x32xf32>
    %c0_27 = arith.constant 0 : index
    %c4 = arith.constant 4 : index
    %c0_28 = arith.constant 0 : index
    %c0_29 = arith.constant 0 : index
    %27 = vector.load %arg1[%c0_27, %c4, %c0_28, %c0_29] : memref<4x8x2x32xbf16, #tpu.memory_space<vmem>>, vector<4x1x2x32xbf16>
    %28 = vector.shape_cast %27 : vector<4x1x2x32xbf16> to vector<4x2x32xbf16>
    %29 = vector.shape_cast %28 : vector<4x2x32xbf16> to vector<8x32xbf16>
    %c4_30 = arith.constant 4 : index
    %c0_31 = arith.constant 0 : index
    %c0_32 = arith.constant 0 : index
    %30 = vector.load %arg2[%c4_30, %c0_31, %c0_32] : memref<8x32x32xbf16, #tpu.memory_space<vmem>>, vector<1x32x32xbf16>
    %31 = vector.shape_cast %30 : vector<1x32x32xbf16> to vector<32x32xbf16>
    %cst_33 = arith.constant dense<0.000000e+00> : vector<8x32xf32>
    %32 = tpu.matmul %29, %31, %cst_33 {dimension_numbers = #tpu.dot_dimension_numbers<[1], [0], [0], [1], [0, 0, 1, 1], [], []>} : vector<8x32xbf16>, vector<32x32xbf16>, vector<8x32xf32> -> vector<8x32xf32>
    %33 = arith.addf %26, %32 : vector<8x32xf32>
    %c0_34 = arith.constant 0 : index
    %c5 = arith.constant 5 : index
    %c0_35 = arith.constant 0 : index
    %c0_36 = arith.constant 0 : index
    %34 = vector.load %arg1[%c0_34, %c5, %c0_35, %c0_36] : memref<4x8x2x32xbf16, #tpu.memory_space<vmem>>, vector<4x1x2x32xbf16>
    %35 = vector.shape_cast %34 : vector<4x1x2x32xbf16> to vector<4x2x32xbf16>
    %36 = vector.shape_cast %35 : vector<4x2x32xbf16> to vector<8x32xbf16>
    %c5_37 = arith.constant 5 : index
    %c0_38 = arith.constant 0 : index
    %c0_39 = arith.constant 0 : index
    %37 = vector.load %arg2[%c5_37, %c0_38, %c0_39] : memref<8x32x32xbf16, #tpu.memory_space<vmem>>, vector<1x32x32xbf16>
    %38 = vector.shape_cast %37 : vector<1x32x32xbf16> to vector<32x32xbf16>
    %cst_40 = arith.constant dense<0.000000e+00> : vector<8x32xf32>
    %39 = tpu.matmul %36, %38, %cst_40 {dimension_numbers = #tpu.dot_dimension_numbers<[1], [0], [0], [1], [0, 0, 1, 1], [], []>} : vector<8x32xbf16>, vector<32x32xbf16>, vector<8x32xf32> -> vector<8x32xf32>
    %40 = arith.addf %33, %39 : vector<8x32xf32>
    %c0_41 = arith.constant 0 : index
    %c6 = arith.constant 6 : index
    %c0_42 = arith.constant 0 : index
    %c0_43 = arith.constant 0 : index
    %41 = vector.load %arg1[%c0_41, %c6, %c0_42, %c0_43] : memref<4x8x2x32xbf16, #tpu.memory_space<vmem>>, vector<4x1x2x32xbf16>
    %42 = vector.shape_cast %41 : vector<4x1x2x32xbf16> to vector<4x2x32xbf16>
    %43 = vector.shape_cast %42 : vector<4x2x32xbf16> to vector<8x32xbf16>
    %c6_44 = arith.constant 6 : index
    %c0_45 = arith.constant 0 : index
    %c0_46 = arith.constant 0 : index
    %44 = vector.load %arg2[%c6_44, %c0_45, %c0_46] : memref<8x32x32xbf16, #tpu.memory_space<vmem>>, vector<1x32x32xbf16>
    %45 = vector.shape_cast %44 : vector<1x32x32xbf16> to vector<32x32xbf16>
    %cst_47 = arith.constant dense<0.000000e+00> : vector<8x32xf32>
    %46 = tpu.matmul %43, %45, %cst_47 {dimension_numbers = #tpu.dot_dimension_numbers<[1], [0], [0], [1], [0, 0, 1, 1], [], []>} : vector<8x32xbf16>, vector<32x32xbf16>, vector<8x32xf32> -> vector<8x32xf32>
    %47 = arith.addf %40, %46 : vector<8x32xf32>
    %c0_48 = arith.constant 0 : index
    %c7 = arith.constant 7 : index
    %c0_49 = arith.constant 0 : index
    %c0_50 = arith.constant 0 : index
    %48 = vector.load %arg1[%c0_48, %c7, %c0_49, %c0_50] : memref<4x8x2x32xbf16, #tpu.memory_space<vmem>>, vector<4x1x2x32xbf16>
    %49 = vector.shape_cast %48 : vector<4x1x2x32xbf16> to vector<4x2x32xbf16>
    %50 = vector.shape_cast %49 : vector<4x2x32xbf16> to vector<8x32xbf16>
    %c7_51 = arith.constant 7 : index
    %c0_52 = arith.constant 0 : index
    %c0_53 = arith.constant 0 : index
    %51 = vector.load %arg2[%c7_51, %c0_52, %c0_53] : memref<8x32x32xbf16, #tpu.memory_space<vmem>>, vector<1x32x32xbf16>
    %52 = vector.shape_cast %51 : vector<1x32x32xbf16> to vector<32x32xbf16>
    %cst_54 = arith.constant dense<0.000000e+00> : vector<8x32xf32>
    %53 = tpu.matmul %50, %52, %cst_54 {dimension_numbers = #tpu.dot_dimension_numbers<[1], [0], [0], [1], [0, 0, 1, 1], [], []>} : vector<8x32xbf16>, vector<32x32xbf16>, vector<8x32xf32> -> vector<8x32xf32>
    %54 = arith.addf %47, %53 : vector<8x32xf32>
    %c0_55 = arith.constant 0 : index
    %c0_56 = arith.constant 0 : index
    %55 = vector.load %arg3[%c0_55, %c0_56] : memref<1x32xf32, #tpu.memory_space<vmem>>, vector<1x32xf32>
    %56 = vector.broadcast %55 : vector<1x32xf32> to vector<8x32xf32>
    %57 = arith.addf %54, %56 : vector<8x32xf32>
    %cst_57 = arith.constant dense<0.000000e+00> : vector<8xf32>
    %58 = vector.multi_reduction <add>, %57, %cst_57 [1] : vector<8x32xf32> to vector<8xf32>
    %59 = vector.shape_cast %58 : vector<8xf32> to vector<8x1xf32>
    %cst_58 = arith.constant 3.200000e+01 : f32
    %60 = vector.broadcast %cst_58 : f32 to vector<8x1xf32>
    %61 = arith.divf %59, %60 : vector<8x1xf32>
    %62 = vector.broadcast %61 : vector<8x1xf32> to vector<8x32xf32>
    %63 = arith.subf %57, %62 : vector<8x32xf32>
    %64 = arith.mulf %63, %63 : vector<8x32xf32>
    %cst_59 = arith.constant dense<0.000000e+00> : vector<8xf32>
    %65 = vector.multi_reduction <add>, %64, %cst_59 [1] : vector<8x32xf32> to vector<8xf32>
    %66 = vector.shape_cast %65 : vector<8xf32> to vector<8x1xf32>
    %cst_60 = arith.constant 3.200000e+01 : f32
    %67 = vector.broadcast %cst_60 : f32 to vector<8x1xf32>
    %68 = arith.divf %66, %67 : vector<8x1xf32>
    %cst_61 = arith.constant 9.99999974E-6 : f32
    %69 = vector.broadcast %cst_61 : f32 to vector<8x1xf32>
    %70 = arith.addf %68, %69 : vector<8x1xf32>
    %71 = math.rsqrt %70 : vector<8x1xf32>
    %72 = vector.broadcast %71 : vector<8x1xf32> to vector<8x32xf32>
    %73 = arith.mulf %63, %72 : vector<8x32xf32>
    %c0_62 = arith.constant 0 : index
    %c0_63 = arith.constant 0 : index
    %74 = vector.load %arg4[%c0_62, %c0_63] : memref<1x32xf32, #tpu.memory_space<vmem>>, vector<1x32xf32>
    %75 = vector.broadcast %74 : vector<1x32xf32> to vector<8x32xf32>
    %76 = arith.mulf %73, %75 : vector<8x32xf32>
    %c0_64 = arith.constant 0 : index
    %c0_65 = arith.constant 0 : index
    %77 = vector.load %arg5[%c0_64, %c0_65] : memref<1x32xf32, #tpu.memory_space<vmem>>, vector<1x32xf32>
    %78 = vector.broadcast %77 : vector<1x32xf32> to vector<8x32xf32>
    %79 = arith.addf %76, %78 : vector<8x32xf32>
    %c0_66 = arith.constant 0 : index
    %c0_67 = arith.constant 0 : index
    %80 = vector.load %arg6[%c0_66, %c0_67] : memref<8x32xf32, #tpu.memory_space<vmem>>, vector<8x32xf32>
    tpu.vector_store %arg6[%c0_66, %c0_67], %79 {strides = array<i32>} : memref<8x32xf32, #tpu.memory_space<vmem>>, vector<8x32xf32>,
    return
  }
  func.func @transform_0(%arg0: i32) -> (i32, i32, i32, i32) {
    %c0_i32 = arith.constant 0 : i32
    %c0_i32_0 = arith.constant 0 : i32
    %c0_i32_1 = arith.constant 0 : i32
    %c0_i32_2 = arith.constant 0 : i32
    return %arg0, %c0_i32, %c0_i32_0, %c0_i32_1 : i32, i32, i32, i32
  }
  func.func @transform_1(%arg0: i32) -> (i32, i32, i32) {
    %c0_i32 = arith.constant 0 : i32
    %c0_i32_0 = arith.constant 0 : i32
    %c0_i32_1 = arith.constant 0 : i32
    %c0_i32_2 = arith.constant 0 : i32
    return %c0_i32, %c0_i32_0, %c0_i32_1 : i32, i32, i32
  }
  func.func @transform_2(%arg0: i32) -> (i32, i32) {
    %c0_i32 = arith.constant 0 : i32
    %c0_i32_0 = arith.constant 0 : i32
    %c0_i32_1 = arith.constant 0 : i32
    return %c0_i32, %c0_i32_0 : i32, i32
  }
  func.func @transform_3(%arg0: i32) -> (i32, i32) {
    %c0_i32 = arith.constant 0 : i32
    %c0_i32_0 = arith.constant 0 : i32
    %c0_i32_1 = arith.constant 0 : i32
    return %c0_i32, %c0_i32_0 : i32, i32
  }
  func.func @transform_4(%arg0: i32) -> (i32, i32) {
    %c0_i32 = arith.constant 0 : i32
    %c0_i32_0 = arith.constant 0 : i32
    %c0_i32_1 = arith.constant 0 : i32
    return %c0_i32, %c0_i32_0 : i32, i32
  }
  func.func @transform_5(%arg0: i32) -> (i32, i32) {
    %c0_i32 = arith.constant 0 : i32
    %c0_i32_0 = arith.constant 0 : i32
    return %arg0, %c0_i32 : i32, i32
  }
}

module attributes {stable_mosaic.version = 11 : i64} {
  func.func @_embed_ln_kernel(%arg0: i32, %arg1: memref<4x4x4x16xbf16, #tpu.memory_space<vmem>>, %arg2: memref<4x16x32xbf16, #tpu.memory_space<vmem>>, %arg3: memref<1x32xf32, #tpu.memory_space<vmem>>, %arg4: memref<1x32xf32, #tpu.memory_space<vmem>>, %arg5: memref<1x32xf32, #tpu.memory_space<vmem>>, %arg6: memref<16x32xf32, #tpu.memory_space<vmem>>) attributes {dimension_semantics = [#tpu.dimension_semantics<parallel>], iteration_bounds = array<i64: 2>, scalar_prefetch = 0 : i64, scratch_operands = 0 : i64, tpu.core_type = #tpu.core_type<tc>, window_params = [{transform_indices = @transform_0, window_bounds = array<i64: 4, 4, 4, 16>}, {pipeline_mode = #tpu.pipeline_mode<synchronous>, transform_indices = @transform_1, window_bounds = array<i64: 4, 16, 32>}, {pipeline_mode = #tpu.pipeline_mode<synchronous>, transform_indices = @transform_2, window_bounds = array<i64: 1, 32>}, {pipeline_mode = #tpu.pipeline_mode<synchronous>, transform_indices = @transform_3, window_bounds = array<i64: 1, 32>}, {pipeline_mode = #tpu.pipeline_mode<synchronous>, transform_indices = @transform_4, window_bounds = array<i64: 1, 32>}, {transform_indices = @transform_5, window_bounds = array<i64: 16, 32>}]} {
    %c0 = arith.constant 0 : index
    %c0_0 = arith.constant 0 : index
    %c0_1 = arith.constant 0 : index
    %c0_2 = arith.constant 0 : index
    %0 = vector.load %arg1[%c0, %c0_0, %c0_1, %c0_2] : memref<4x4x4x16xbf16, #tpu.memory_space<vmem>>, vector<4x1x4x16xbf16>
    %1 = vector.shape_cast %0 : vector<4x1x4x16xbf16> to vector<4x4x16xbf16>
    %2 = vector.shape_cast %1 : vector<4x4x16xbf16> to vector<16x16xbf16>
    %c0_3 = arith.constant 0 : index
    %c0_4 = arith.constant 0 : index
    %c0_5 = arith.constant 0 : index
    %3 = vector.load %arg2[%c0_3, %c0_4, %c0_5] : memref<4x16x32xbf16, #tpu.memory_space<vmem>>, vector<1x16x32xbf16>
    %4 = vector.shape_cast %3 : vector<1x16x32xbf16> to vector<16x32xbf16>
    %cst = arith.constant dense<0.000000e+00> : vector<16x32xf32>
    %5 = tpu.matmul %2, %4, %cst {dimension_numbers = #tpu.dot_dimension_numbers<[1], [0], [0], [1], [0, 0, 1, 1], [], []>} : vector<16x16xbf16>, vector<16x32xbf16>, vector<16x32xf32> -> vector<16x32xf32>
    %c0_6 = arith.constant 0 : index
    %c1 = arith.constant 1 : index
    %c0_7 = arith.constant 0 : index
    %c0_8 = arith.constant 0 : index
    %6 = vector.load %arg1[%c0_6, %c1, %c0_7, %c0_8] : memref<4x4x4x16xbf16, #tpu.memory_space<vmem>>, vector<4x1x4x16xbf16>
    %7 = vector.shape_cast %6 : vector<4x1x4x16xbf16> to vector<4x4x16xbf16>
    %8 = vector.shape_cast %7 : vector<4x4x16xbf16> to vector<16x16xbf16>
    %c1_9 = arith.constant 1 : index
    %c0_10 = arith.constant 0 : index
    %c0_11 = arith.constant 0 : index
    %9 = vector.load %arg2[%c1_9, %c0_10, %c0_11] : memref<4x16x32xbf16, #tpu.memory_space<vmem>>, vector<1x16x32xbf16>
    %10 = vector.shape_cast %9 : vector<1x16x32xbf16> to vector<16x32xbf16>
    %cst_12 = arith.constant dense<0.000000e+00> : vector<16x32xf32>
    %11 = tpu.matmul %8, %10, %cst_12 {dimension_numbers = #tpu.dot_dimension_numbers<[1], [0], [0], [1], [0, 0, 1, 1], [], []>} : vector<16x16xbf16>, vector<16x32xbf16>, vector<16x32xf32> -> vector<16x32xf32>
    %12 = arith.addf %5, %11 : vector<16x32xf32>
    %c0_13 = arith.constant 0 : index
    %c2 = arith.constant 2 : index
    %c0_14 = arith.constant 0 : index
    %c0_15 = arith.constant 0 : index
    %13 = vector.load %arg1[%c0_13, %c2, %c0_14, %c0_15] : memref<4x4x4x16xbf16, #tpu.memory_space<vmem>>, vector<4x1x4x16xbf16>
    %14 = vector.shape_cast %13 : vector<4x1x4x16xbf16> to vector<4x4x16xbf16>
    %15 = vector.shape_cast %14 : vector<4x4x16xbf16> to vector<16x16xbf16>
    %c2_16 = arith.constant 2 : index
    %c0_17 = arith.constant 0 : index
    %c0_18 = arith.constant 0 : index
    %16 = vector.load %arg2[%c2_16, %c0_17, %c0_18] : memref<4x16x32xbf16, #tpu.memory_space<vmem>>, vector<1x16x32xbf16>
    %17 = vector.shape_cast %16 : vector<1x16x32xbf16> to vector<16x32xbf16>
    %cst_19 = arith.constant dense<0.000000e+00> : vector<16x32xf32>
    %18 = tpu.matmul %15, %17, %cst_19 {dimension_numbers = #tpu.dot_dimension_numbers<[1], [0], [0], [1], [0, 0, 1, 1], [], []>} : vector<16x16xbf16>, vector<16x32xbf16>, vector<16x32xf32> -> vector<16x32xf32>
    %19 = arith.addf %12, %18 : vector<16x32xf32>
    %c0_20 = arith.constant 0 : index
    %c3 = arith.constant 3 : index
    %c0_21 = arith.constant 0 : index
    %c0_22 = arith.constant 0 : index
    %20 = vector.load %arg1[%c0_20, %c3, %c0_21, %c0_22] : memref<4x4x4x16xbf16, #tpu.memory_space<vmem>>, vector<4x1x4x16xbf16>
    %21 = vector.shape_cast %20 : vector<4x1x4x16xbf16> to vector<4x4x16xbf16>
    %22 = vector.shape_cast %21 : vector<4x4x16xbf16> to vector<16x16xbf16>
    %c3_23 = arith.constant 3 : index
    %c0_24 = arith.constant 0 : index
    %c0_25 = arith.constant 0 : index
    %23 = vector.load %arg2[%c3_23, %c0_24, %c0_25] : memref<4x16x32xbf16, #tpu.memory_space<vmem>>, vector<1x16x32xbf16>
    %24 = vector.shape_cast %23 : vector<1x16x32xbf16> to vector<16x32xbf16>
    %cst_26 = arith.constant dense<0.000000e+00> : vector<16x32xf32>
    %25 = tpu.matmul %22, %24, %cst_26 {dimension_numbers = #tpu.dot_dimension_numbers<[1], [0], [0], [1], [0, 0, 1, 1], [], []>} : vector<16x16xbf16>, vector<16x32xbf16>, vector<16x32xf32> -> vector<16x32xf32>
    %26 = arith.addf %19, %25 : vector<16x32xf32>
    %c0_27 = arith.constant 0 : index
    %c0_28 = arith.constant 0 : index
    %27 = vector.load %arg3[%c0_27, %c0_28] : memref<1x32xf32, #tpu.memory_space<vmem>>, vector<1x32xf32>
    %28 = vector.broadcast %27 : vector<1x32xf32> to vector<16x32xf32>
    %29 = arith.addf %26, %28 : vector<16x32xf32>
    %cst_29 = arith.constant dense<0.000000e+00> : vector<16xf32>
    %30 = vector.multi_reduction <add>, %29, %cst_29 [1] : vector<16x32xf32> to vector<16xf32>
    %31 = vector.shape_cast %30 : vector<16xf32> to vector<16x1xf32>
    %cst_30 = arith.constant 3.200000e+01 : f32
    %32 = vector.broadcast %cst_30 : f32 to vector<16x1xf32>
    %33 = arith.divf %31, %32 : vector<16x1xf32>
    %34 = vector.broadcast %33 : vector<16x1xf32> to vector<16x32xf32>
    %35 = arith.subf %29, %34 : vector<16x32xf32>
    %36 = arith.mulf %35, %35 : vector<16x32xf32>
    %cst_31 = arith.constant dense<0.000000e+00> : vector<16xf32>
    %37 = vector.multi_reduction <add>, %36, %cst_31 [1] : vector<16x32xf32> to vector<16xf32>
    %38 = vector.shape_cast %37 : vector<16xf32> to vector<16x1xf32>
    %cst_32 = arith.constant 3.200000e+01 : f32
    %39 = vector.broadcast %cst_32 : f32 to vector<16x1xf32>
    %40 = arith.divf %38, %39 : vector<16x1xf32>
    %cst_33 = arith.constant 9.99999974E-6 : f32
    %41 = vector.broadcast %cst_33 : f32 to vector<16x1xf32>
    %42 = arith.addf %40, %41 : vector<16x1xf32>
    %43 = math.rsqrt %42 : vector<16x1xf32>
    %44 = vector.broadcast %43 : vector<16x1xf32> to vector<16x32xf32>
    %45 = arith.mulf %35, %44 : vector<16x32xf32>
    %c0_34 = arith.constant 0 : index
    %c0_35 = arith.constant 0 : index
    %46 = vector.load %arg4[%c0_34, %c0_35] : memref<1x32xf32, #tpu.memory_space<vmem>>, vector<1x32xf32>
    %47 = vector.broadcast %46 : vector<1x32xf32> to vector<16x32xf32>
    %48 = arith.mulf %45, %47 : vector<16x32xf32>
    %c0_36 = arith.constant 0 : index
    %c0_37 = arith.constant 0 : index
    %49 = vector.load %arg5[%c0_36, %c0_37] : memref<1x32xf32, #tpu.memory_space<vmem>>, vector<1x32xf32>
    %50 = vector.broadcast %49 : vector<1x32xf32> to vector<16x32xf32>
    %51 = arith.addf %48, %50 : vector<16x32xf32>
    %c0_38 = arith.constant 0 : index
    %c0_39 = arith.constant 0 : index
    %52 = vector.load %arg6[%c0_38, %c0_39] : memref<16x32xf32, #tpu.memory_space<vmem>>, vector<16x32xf32>
    tpu.vector_store %arg6[%c0_38, %c0_39], %51 {strides = array<i32>} : memref<16x32xf32, #tpu.memory_space<vmem>>, vector<16x32xf32>,
    return
  }
  func.func @transform_0(%arg0: i32) -> (i32, i32, i32, i32) {
    %c0_i32 = arith.constant 0 : i32
    %c0_i32_0 = arith.constant 0 : i32
    %c0_i32_1 = arith.constant 0 : i32
    %c0_i32_2 = arith.constant 0 : i32
    return %arg0, %c0_i32, %c0_i32_0, %c0_i32_1 : i32, i32, i32, i32
  }
  func.func @transform_1(%arg0: i32) -> (i32, i32, i32) {
    %c0_i32 = arith.constant 0 : i32
    %c0_i32_0 = arith.constant 0 : i32
    %c0_i32_1 = arith.constant 0 : i32
    %c0_i32_2 = arith.constant 0 : i32
    return %c0_i32, %c0_i32_0, %c0_i32_1 : i32, i32, i32
  }
  func.func @transform_2(%arg0: i32) -> (i32, i32) {
    %c0_i32 = arith.constant 0 : i32
    %c0_i32_0 = arith.constant 0 : i32
    %c0_i32_1 = arith.constant 0 : i32
    return %c0_i32, %c0_i32_0 : i32, i32
  }
  func.func @transform_3(%arg0: i32) -> (i32, i32) {
    %c0_i32 = arith.constant 0 : i32
    %c0_i32_0 = arith.constant 0 : i32
    %c0_i32_1 = arith.constant 0 : i32
    return %c0_i32, %c0_i32_0 : i32, i32
  }
  func.func @transform_4(%arg0: i32) -> (i32, i32) {
    %c0_i32 = arith.constant 0 : i32
    %c0_i32_0 = arith.constant 0 : i32
    %c0_i32_1 = arith.constant 0 : i32
    return %c0_i32, %c0_i32_0 : i32, i32
  }
  func.func @transform_5(%arg0: i32) -> (i32, i32) {
    %c0_i32 = arith.constant 0 : i32
    %c0_i32_0 = arith.constant 0 : i32
    return %arg0, %c0_i32 : i32, i32
  }
}

</mosaic_0001>

<bundles_post_ra>
// kernel: _lambda_.2
= control target key start
LH: loop header
LB: loop body
LE: loop exit
PB: predicated region body
PF: predicated region fallthrough
CT: control target
= control target key end

     0   :  { %10 = vsyncpa [#allocation3], 0  ;;  %s1055_s0 = inlined_call_operand.vmem [shape: bf16[8,4,4,16], index: 0, kind: input, shape index: {}]   ;;  %s1056_s1 = inlined_call_operand.vmem [shape: bf16[4,16,32], index: 1, kind: input, shape index: {}]   ;;  %s1057_s2 = inlined_call_operand.vmem [shape: f32[1,32], index: 2, kind: input, shape index: {}, may-alias: {2,4}]   ;;  %s1058_s3 = inlined_call_operand.vmem [shape: f32[1,32], index: 3, kind: input, shape index: {}]   ;;  %s1059_s4 = inlined_call_operand.vmem [shape: f32[1,32], index: 4, kind: input, shape index: {}, may-alias: {2,4}]   ;;  %s1060_s5 = inlined_call_operand.hbm [shape: f32[32,32], index: 5, kind: output, shape index: {}]  }
   0x1   :  { %12 = vsyncpa [#allocation3 + $0x1], 0  ;;  %s918_s18 = smov 0   ;;  %s920_s19 = smov 0  }
   0x2   :  { %s922_s20 = smov 0   ;;  %s924_s21 = smov 0  }
   0x3 LB: > { %s939_s22 = sadd.s32 4294967295, %s880_s21   ;;  %s682_s23 = sadd.s32 4294967294, %s880_s21   ;;  %s880_s21 = sphi %s924_s21, %s1066_s21   ;;  %s876_s20 = sphi %s922_s20, %s1065_s20   ;;  %s872_s19 = sphi %s920_s19, %s1064_s19   ;;  %s868_s18 = sphi %s918_s18, %s1063_s18  }
   0x4   : > { %s943_s24 = sadd.s32 1, %s880_s21   ;;  %s135_s25 = sadd.s32 1, %s876_s20 }
   0x5   : > { %s132_s26 = ssub.s32 %s880_s21, %s943_s24  ;;  %p145_p0 = scmp.ne.s32.totalorder %s876_s20, %s872_s19 }
   0x6   : > { %p133_p1 = scmp.eq.s32.totalorder %s132_s26, 0  ;;  %p146_p2 = scmp.eq.s32.totalorder %s939_s22, 1 }
   0x7   : > { %p151_p3 = scmp.ne.s32.totalorder %s872_s19, %s868_s18  ;;  %p152_p4 = scmp.eq.s32.totalorder %s682_s23, 1 }
   0x8   : > { %s954_s27 = scalar_select %p133_p1, %s876_s20, %s135_s25  }
   0x9   : > { %p956_p5 = por %p146_p2, %p145_p0  ;;  %p960_p6 = por %p152_p4, %p151_p3 }
   0xa   : > { %p685_p7 = scmp.ge.s32.totalorder %s880_s21, 1  ;;  %p192_p8 = scmp.lt.s32.totalorder %s880_s21, 3 }
   0xc   : > { %p193_p9 = pnand %p685_p7, %p192_p8 }
   0xd   : > { %v802_v0 = vld [vmem:[%s1056_s1 + $0x8] sm:$0xff] (!%p193_p9)   ;;  %v253_v1 = vlaneseq (!%p193_p9)  ;;  %v882_v2 = vmov (!%p193_p9), 0.0   ;;  %v803_v3 = vld [vmem:[%s1056_s1] sm:$0xff] (!%p193_p9)   ;;  %vm883_vm0 = vmmov (!%p193_p9), 0   ;;  %s687_s9 = sshll.u32 (!%p193_p9), %s939_s22, 2  ;;  %vm271_vm1 = vcmask (!%p193_p9), 130048  }
   0xe   : > { %196 = sbr.rel (%p193_p9) target bundleno = 587 (0x24b), region = 40  ;;  %734 = vmatprep.subr.bf16.mxu0 (!%p193_p9), %v882_v2  ;;  %740 = vmatprep.subr.bf16.mxu1 (!%p193_p9), %v882_v2  ;;  %p222_p10 = scmp.lt.s32.totalorder (!%p193_p9), %s687_s9, 7  ;;  %v884_v4 = vmov (!%p193_p9), 1983009808   ;;  %v808_v12 = vld [vmem:[%s1056_s1 + $0x10] sm:$0xff] (!%p193_p9)   ;;  %v809_v20 = vld [vmem:[%s1056_s1 + $0x18] sm:$0xff] (!%p193_p9)  }
   0xf   : > { %735 = vmatpush3.bf16.msra.mxu0 (!%p193_p9), %v802_v0  ;;  %736 = vmatprep.mubr.msk.bf16.mxu0 (!%p193_p9), %vm883_vm0, %v882_v2  ;;  %v251_v5 = vunpack.c.l.s4 (!%p193_p9), %v884_v4  ;;  %v254_v6 = vshrl.u32 (!%p193_p9), %v253_v1, 7  ;;  %v716_v46 = vld [vmem:[%s1057_s2] ss:$0 sm:$0xff] (!%p193_p9)  ;;  %vm558_vm2 = vcmask (!%p193_p9), 261120   ;;  %s218_s26 = sand.u32 (!%p193_p9), 1, %s872_s19   ;;  %s885_s17 = smov (!%p193_p9), [#allocation2]  }
  0x10   : > { %741 = vmatpush3.bf16.msra.mxu1 (!%p193_p9), %v803_v3  ;;  %742 = vmatprep.mubr.msk.bf16.mxu1 (!%p193_p9), %vm883_vm0, %v882_v2  ;;  %s686_s7 = sshll.u32 (!%p193_p9), %s218_s26, 4  ;;  %s1014_s16 = scalar_lea.sflag (!%p193_p9), [#allocation3], %s218_s26 }
  0x11   : > { %746 = vmatprep.subr.bf16.mxu0 (!%p193_p9), %v882_v2  ;;  %752 = vmatprep.subr.bf16.mxu1 (!%p193_p9), %v882_v2  ;;  %v252_v7 = vunpack.c.0.s8 (!%p193_p9), %v251_v5  ;;  %s220_s11 = scalar_lea.vmem (!%p193_p9), [#allocation2], %s686_s7  ;;  %s822_s23 = sshll.u32 (!%p193_p9), %s885_s17, 4  ;;  %s823_s23 = int_to_ptr.vmem [resolvable:$false] %s822_s23 }
  0x12   : > { %s620_s12 = sshll.u32 (!%p193_p9), %s220_s11, 4  ;;  %s824_s25 = scalar_lea.vmem (!%p193_p9), %s823_s23, 512  ;;  %s1011_s12 = int_to_ptr.vmem [resolvable:$true] %s620_s12 }
  0x13   : > { %v255_v8 = vsub.s32 (!%p193_p9), %v252_v7, %v254_v6  ;;  %p825_p0 = scmp.lt.s32.totalorder (!%p193_p9), %s1011_s12, %s823_s23 }
  0x15   : > { %s1068_s9 = smov (!%p222_p10, %s687_s9), 7 }
  0x16   : > { %s724_s10 = sshll.u32 %s1068_s9, 3 }
  0x17   : > { %s226_s13 = scalar_lea.vmem %s1055_s0, %s724_s10  ;;  %s725_s10 = sshll.u32 %s939_s22, 8 }
  0x18   : > { %v804_v9 = vld [vmem:[%s226_s13 + $0x2] ss:$8 sps:$4 sm:$0x33]   ;;  %v805_v10 = vld [vmem:[%s226_s13 + $0x12] ss:$8 sps:$4 sm:$0x33]   ;;  %s1009_s15 = scalar_lea.hbm %s1060_s5, %s725_s10 }
  0x19   : > { %v256_v11 = vrot.slane %v804_v9, %v255_v8  ;;  %v263_v13 = vrot.slane %v805_v10, %v255_v8  ;;  %v806_v14 = vld [vmem:[%s226_s13] ss:$8 sps:$4 sm:$0x33]   ;;  %v807_v15 = vld [vmem:[%s226_s13 + $0x10] ss:$8 sps:$4 sm:$0x33]  }
  0x1a   : > { %v328_v17 = vrot.slane %v806_v14, %v255_v8  ;;  %v335_v18 = vrot.slane %v807_v15, %v255_v8  ;;  %v810_v19 = vld [vmem:[%s226_s13 + $0x4] ss:$8 sps:$4 sm:$0x33]   ;;  %v811_v21 = vld [vmem:[%s226_s13 + $0x14] ss:$8 sps:$4 sm:$0x33]  }
  0x1b   : > { %v264_v16 = vcombine.low %v256_v11, %v263_v13  ;;  %v407_v23 = vrot.slane %v810_v19, %v255_v8  ;;  %v414_v24 = vrot.slane %v811_v21, %v255_v8  ;;  %v812_v25 = vld [vmem:[%s226_s13 + $0x6] ss:$8 sps:$4 sm:$0x33]   ;;  %v813_v26 = vld [vmem:[%s226_s13 + $0x16] ss:$8 sps:$4 sm:$0x33]  }
  0x1c   : > { %v336_v22 = vcombine.low %v328_v17, %v335_v18  ;;  %v488_v27 = vrot.slane %v812_v25, %v255_v8  ;;  %v495_v28 = vrot.slane %v813_v26, %v255_v8  ;;  %v717_v11 = vld [vmem:[%s1058_s3] ss:$0 sm:$0xff]  ;;  %s818_s22 = scalar_lea.vmem %s1011_s12, 256 }
  0x1d   : > { %737 = vmatmul.mubr.msk.bf16.vlgmr.msra.gmra.mrb[0].mxu0 %vm271_vm1, %v264_v16  ;;  %v415_v29 = vcombine.low %v407_v23, %v414_v24  ;;  %v718_v13 = vld [vmem:[%s1059_s4] ss:$0 sm:$0xff]  ;;  %p819_p11 = scmp.ne.s32.totalorder %s1011_s12, %s818_s22  ;;  %p826_p1 = scmp.lt.s32.totalorder %s824_s25, %s818_s22 }
  0x1e   : > { %747 = vmatpush3.bf16.msra.mxu0 %v808_v12  ;;  %748 = vmatprep.mubr.msk.bf16.mxu0 %vm883_vm0, %v882_v2  ;;  %v496_v30 = vcombine.low %v488_v27, %v495_v28 }
  0x1f   : > { %743 = vmatmul.mubr.msk.bf16.vlgmr.msra.gmra.mrb[0].mxu1 %vm271_vm1, %v336_v22  ;;  %p820_p12 = pnand %p819_p11, %p956_p5  ;;  %p827_p2 = por %p826_p1, %p825_p0 }
  0x20   : > { %753 = vmatpush3.bf16.msra.mxu1 %v809_v20  ;;  %754 = vmatprep.mubr.msk.bf16.mxu1 %vm883_vm0, %v882_v2 }
  0x21   : > { %p821_p13 = pneg %p820_p12 }
  0x23   : > { %p828_p3 = pnand %p827_p2, %p821_p13 }
  0x25   : > { %749 = vmatmul.mubr.msk.bf16.vlgmr.msra.gmra.mrb[4].mxu0 %vm271_vm1, %v415_v29 }
  0x27   : > { %755 = vmatmul.mubr.msk.bf16.vlgmr.msra.gmra.mrb[4].mxu1 %vm271_vm1, %v496_v30 }
  0xf0   : > { %v309_v31 = vpop.f32.mrb[0].mxu0 }
  0xf1   : > { %v738_v32 = vpop.f32.mrb[1].mxu0 }
  0xf2   : > { %v380_v33 = vpop.f32.mrb[0].mxu1  ;;  %v312_v34 = vpop.f32.mrb[2].mxu0 }
  0xf3   : > { %v381_v35 = vadd.f32 %v380_v33, %v309_v31  ;;  %v744_v36 = vpop.f32.mrb[1].mxu1  ;;  %v739_v37 = vpop.f32.mrb[3].mxu0 }
  0xf4   : > { %v383_v38 = vpop.f32.mrb[2].mxu1 }
  0xf5   : > { %v384_v39 = vadd.f32 %v383_v38, %v312_v34  ;;  %v745_v40 = vpop.f32.mrb[3].mxu1 }
  0xf8   : > { %v459_v41 = vpop.f32.mrb[4].mxu0 }
  0xf9   : > { %v466_v42 = vadd.f32 %v459_v41, %v381_v35  ;;  %v750_v43 = vpop.f32.mrb[5].mxu0 }
  0xfa   : > { %v540_v44 = vpop.f32.mrb[4].mxu1  ;;  %v462_v45 = vpop.f32.mrb[6].mxu0 }
  0xfb   : > { %v547_v47 = vadd.f32 %v540_v44, %v466_v42  ;;  %v756_v48 = vpop.f32.mrb[5].mxu1  ;;  %v467_v49 = vadd.f32 %v462_v45, %v384_v39  ;;  %v751_v50 = vpop.f32.mrb[7].mxu0 }
  0xfc   : > { %v543_v51 = vpop.f32.mrb[6].mxu1 }
  0xfd   : > { %v548_v52 = vadd.f32 %v543_v51, %v467_v49  ;;  %v757_v53 = vpop.f32.mrb[7].mxu1  ;;  %v556_v54 = vadd.f32 %v716_v46, %v547_v47 }
  0xff   : > { %v559_v55 = vsel %vm558_vm2, %v556_v54, 0.0  ;;  %v557_v56 = vadd.f32 %v716_v46, %v548_v52 }
 0x100   : > { %560 = vadd.xlane.f32.xlu0 %v559_v55 }
 0x101   : > { %v562_v57 = vsel %vm558_vm2, %v557_v56, 0.0 }
 0x104   : > { %563 = vadd.xlane.f32.xlu0 %v562_v57 }
 0x18d   : > { %v561_v58 = vpop.xlane.xlu0 %560 }
 0x18e   : > { %v566_v59 = vmul.f32 0.03125, %v561_v58 }
 0x190   : > { %v568_v60 = vsub.f32 %v556_v54, %v566_v59 }
 0x191   : > { %v564_v61 = vpop.xlane.xlu0 %563 }
 0x192   : > { %v567_v62 = vmul.f32 0.03125, %v564_v61  ;;  %v570_v63 = vmul.f32 %v568_v60, %v568_v60 }
 0x194   : > { %v569_v0 = vsub.f32 %v557_v56, %v567_v62  ;;  %v572_v1 = vsel %vm558_vm2, %v570_v63, 0.0 }
 0x195   : > { %573 = vadd.xlane.f32.xlu1 %v572_v1 }
 0x196   : > { %v571_v2 = vmul.f32 %v569_v0, %v569_v0 }
 0x198   : > { %v575_v3 = vsel %vm558_vm2, %v571_v2, 0.0 }
 0x199   : > { %576 = vadd.xlane.f32.xlu1 %v575_v3 }
 0x222   : > { %v574_v4 = vpop.xlane.xlu1 %573 }
 0x223   : > { %v578_v5 = vmul.f32 0.03125, %v574_v4 }
 0x225   : > { %v580_v6 = vadd.f32 1e-05, %v578_v5 }
 0x226   : > { %v577_v7 = vpop.xlane.xlu1 %576 }
 0x227   : > { %814 = vrsqrt.f32 %v580_v6  ;;  %v579_v8 = vmul.f32 0.03125, %v577_v7 }
 0x229   : > { %v581_v9 = vadd.f32 1e-05, %v579_v8 }
 0x22b   : > { %816 = vrsqrt.f32 %v581_v9 }
 0x231   : > { %v815_v10 = vpop.eup %814 }
 0x232   : > { %v584_v12 = vmul.f32 %v815_v10, %v568_v60 }
 0x234   : > { %v593_v14 = vmul.f32 %v717_v11, %v584_v12 }
 0x235   : > { %v817_v15 = vpop.eup %816 }
 0x236   : > { %v585_v16 = vmul.f32 %v817_v15, %v569_v0  ;;  %v602_v17 = vadd.f32 %v718_v13, %v593_v14 }
 0x238   : > { %v594_v18 = vmul.f32 %v717_v11, %v585_v16  ;;  %604 = vst.msk [vmem:[%s220_s11] sm:$0xff] %vm558_vm2, %v602_v17 }
 0x23a   : > { %v603_v19 = vadd.f32 %v718_v13, %v594_v18 }
 0x23c   : > { %605 = vst.msk [vmem:[%s220_s11 + $0x8] sm:$0xff] %vm558_vm2, %v603_v19 }
 0x23d   : > { %831 = shalt.err (!%p828_p3)
}
 0x23e   : > { %s832_s26 = scalar_lea.hbm %s1009_s15, 256  ;;  %s836_s7 = scalar_lea.hbm %s1060_s5, 512 }
 0x23f   : > { %p833_p4 = scmp.ne.s32.totalorder %s1009_s15, %s832_s26  ;;  %p837_p9 = scmp.lt.u32.totalorder %s1009_s15, %s1060_s5 }
 0x240   : > { %p838_p10 = scmp.lt.u32.totalorder %s836_s7, %s832_s26  ;;  %p840_p12 = scmp.lt.u32.totalorder %s832_s26, %s1009_s15 }
 0x241   : > { %p834_p7 = pnand %p833_p4, %p956_p5 }
 0x242   : > { %p839_p11 = por %p838_p10, %p837_p9 }
 0x243   : > { %p835_p8 = pneg %p834_p7 }
 0x244   : > { %p841_p13 = por %p840_p12, %p839_p11 }
 0x246   : > { %p842_p0 = pnand %p841_p13, %p835_p8 }
 0x248   : > { %845 = shalt.err (!%p842_p0)
}
 0x249   : > { %s886_s10 = smov 128   ;;  %s887_s11 = smov 8  }
 0x24a   : > { %758 = dma.vmem_to_hbm [thread:$0]  (%p956_p5), %s1011_s12, 256, %s1009_s15, %s1014_s16, %s886_s10, %s886_s10, %s887_s11  }
 0x24b PF: > { %p764_p1 = scmp.ge.s32.totalorder %s880_s21, 2  ;;  %s635_s13 = sand.u32 1, %s868_s18  }
 0x24c   : > { %s636_s14 = scalar_lea.sflag [#allocation3], %s635_s13 }
 0x24d   : > { %p761_p2 = pnand %p764_p1, %p960_p6 }
 0x24f   : > { %863 = dma.done.wait (!%p761_p2), %s636_s14, 256  }
 0x250   : > { %865 = vsyncadd (!%p761_p2), %s636_s14, 4294967040  ;;  %p15_p3 = scmp.ge.s32.totalorder %s943_s24, 4   ;;  %s1063_s18 = smov %s872_s19 }
 0x251   : > { %s1064_s19 = smov %s876_s20  ;;  %s1065_s20 = smov %s954_s27 }
 0x252   : > { %s1066_s21 = smov %s943_s24  ;;  %17 = sbr.rel (!%p15_p3) target bundleno = 3 (0x3), region = 81 }
 0x259   :  { %641 = vsyncpa [#allocation3], 1 }
 0x25a   :  { %643 = vsyncpa [#allocation3 + $0x1], 1 }

// kernel: _lambda_.3
= control target key start
LH: loop header
LB: loop body
LE: loop exit
PB: predicated region body
PF: predicated region fallthrough
CT: control target
= control target key end

     0   :  { %v1057_v1 = vmov 0.0   ;;  %vm1058_vm0 = vmmov 0   ;;  %v49_v4 = vlaneseq  ;;  %v1059_v9 = vmov 1966171168   ;;  %s1277_s0 = inlined_call_operand.vmem [shape: bf16[4,8,2,32], index: 0, kind: input, shape index: {}]   ;;  %s1278_s1 = inlined_call_operand.vmem [shape: bf16[8,32,32], index: 1, kind: input, shape index: {}]   ;;  %s1279_s2 = inlined_call_operand.vmem [shape: f32[1,32], index: 2, kind: input, shape index: {}, may-alias: {2,4}]   ;;  %s1280_s3 = inlined_call_operand.vmem [shape: f32[1,32], index: 3, kind: input, shape index: {}]   ;;  %s1281_s4 = inlined_call_operand.vmem [shape: f32[1,32], index: 4, kind: input, shape index: {}, may-alias: {2,4}]   ;;  %s1282_s5 = inlined_call_operand.hbm [shape: f32[8,32], index: 5, kind: output, shape index: {}]  }
   0x1   :  { %v999_v0 = vld [vmem:[%s1278_s1 + $0x10] sm:$0xff]   ;;  %931 = vmatprep.subr.bf16.mxu0 %v1057_v1  ;;  %939 = vmatprep.subr.bf16.mxu1 %v1057_v1  ;;  %v1000_v2 = vld [vmem:[%s1278_s1] sm:$0xff]   ;;  %v1001_v3 = vld [vmem:[%s1278_s1 + $0x18] sm:$0xff]   ;;  %v47_v10 = vunpack.c.l.s4 %v1059_v9  ;;  %vm80_vm1 = vcmask 261120  }
   0x2   :  { %932 = vmatpush3.bf16.msra.mxu0 %v999_v0  ;;  %935 = vmatprep.mubr.msk.bf16.mxu0 %vm1058_vm0, %v1057_v1  ;;  %v1002_v5 = vld [vmem:[%s1278_s1 + $0x8] sm:$0xff]   ;;  %v50_v6 = vshrl.u32 %v49_v4, 7  ;;  %v1004_v8 = vld [vmem:[%s1277_s0 + $0x11] ss:$8 sps:$4 sm:$0x11]   ;;  %v1007_v19 = vld [vmem:[%s1278_s1 + $0x20] sm:$0xff]  }
   0x3   :  { %940 = vmatpush3.bf16.msra.mxu1 %v1000_v2  ;;  %933 = vmatprep.subr.bf16.mxu0 %v1057_v1  ;;  %v1003_v7 = vld [vmem:[%s1277_s0 + $0x1] ss:$8 sps:$4 sm:$0x11]   ;;  %v1005_v11 = vld [vmem:[%s1277_s0] ss:$8 sps:$4 sm:$0x11]   ;;  %v48_v12 = vunpack.c.0.s8 %v47_v10 }
   0x4   :  { %941 = vmatprep.subr.bf16.mxu1 %v1057_v1  ;;  %943 = vmatprep.mubr.msk.bf16.mxu1 %vm1058_vm0, %v1057_v1  ;;  %v1006_v13 = vld [vmem:[%s1277_s0 + $0x10] ss:$8 sps:$4 sm:$0x11]   ;;  %v1011_v21 = vld [vmem:[%s1277_s0 + $0x2] ss:$8 sps:$4 sm:$0x11]  }
   0x5   :  { %v1125_v14 = vsub.s32 %v48_v12, %v50_v6  ;;  %v1008_v20 = vld [vmem:[%s1278_s1 + $0x30] sm:$0xff]   ;;  %v1013_v27 = vld [vmem:[%s1277_s0 + $0x3] ss:$8 sps:$4 sm:$0x11]   ;;  %v1010_v35 = vld [vmem:[%s1278_s1 + $0x38] sm:$0xff]  }
   0x6   :  { %934 = vmatpush3.bf16.msra.mxu0 %v1001_v3  ;;  %v1012_v22 = vld [vmem:[%s1277_s0 + $0x12] ss:$8 sps:$4 sm:$0x11]   ;;  %v1014_v28 = vld [vmem:[%s1277_s0 + $0x13] ss:$8 sps:$4 sm:$0x11]  }
   0x7   :  { %942 = vmatpush3.bf16.msra.mxu1 %v1002_v5  ;;  %947 = vmatprep.subr.bf16.mxu0 %v1057_v1  ;;  %v52_v15 = vrot.slane %v1003_v7, %v1125_v14  ;;  %v59_v16 = vrot.slane %v1004_v8, %v1125_v14  ;;  %v136_v17 = vrot.slane %v1005_v11, %v1125_v14  ;;  %v1009_v33 = vld [vmem:[%s1278_s1 + $0x28] sm:$0xff]   ;;  %v1015_v37 = vld [vmem:[%s1278_s1 + $0x40] sm:$0xff]   ;;  %v1016_v41 = vld [vmem:[%s1278_s1 + $0x50] sm:$0xff]  }
   0x8   :  { %955 = vmatprep.subr.bf16.mxu1 %v1057_v1  ;;  %v143_v18 = vrot.slane %v1006_v13, %v1125_v14  ;;  %v229_v25 = vrot.slane %v1011_v21, %v1125_v14  ;;  %v236_v26 = vrot.slane %v1012_v22, %v1125_v14  ;;  %v323_v31 = vrot.slane %v1013_v27, %v1125_v14  ;;  %v1019_v38 = vld [vmem:[%s1277_s0 + $0x4] ss:$8 sps:$4 sm:$0x11]   ;;  %v1020_v42 = vld [vmem:[%s1277_s0 + $0x14] ss:$8 sps:$4 sm:$0x11]  }
   0x9   :  { %v60_v23 = vcombine.low %v52_v15, %v59_v16  ;;  %v330_v32 = vrot.slane %v1014_v28, %v1125_v14  ;;  %v417_v43 = vrot.slane %v1019_v38, %v1125_v14  ;;  %v424_v44 = vrot.slane %v1020_v42, %v1125_v14  ;;  %v1021_v45 = vld [vmem:[%s1277_s0 + $0x5] ss:$8 sps:$4 sm:$0x11]   ;;  %v1022_v46 = vld [vmem:[%s1277_s0 + $0x15] ss:$8 sps:$4 sm:$0x11]  }
   0xa   :  { %v144_v24 = vcombine.low %v136_v17, %v143_v18  ;;  %v237_v34 = vcombine.low %v229_v25, %v236_v26  ;;  %v1017_v47 = vld [vmem:[%s1278_s1 + $0x48] sm:$0xff]   ;;  %v511_v49 = vrot.slane %v1021_v45, %v1125_v14  ;;  %v518_v50 = vrot.slane %v1022_v46, %v1125_v14  ;;  %v1018_v51 = vld [vmem:[%s1278_s1 + $0x58] sm:$0xff]   ;;  %v1023_v53 = vld [vmem:[%s1278_s1 + $0x60] sm:$0xff]  }
   0xb   :  { %v67_v29 = vrot.slane %v60_v23, %v1125_v14  ;;  %v331_v36 = vcombine.low %v323_v31, %v330_v32  ;;  %v425_v48 = vcombine.low %v417_v43, %v424_v44  ;;  %v1024_v54 = vld [vmem:[%s1278_s1 + $0x70] sm:$0xff]   ;;  %v1027_v57 = vld [vmem:[%s1277_s0 + $0x6] ss:$8 sps:$4 sm:$0x11]  }
   0xc   :  { %v151_v30 = vrot.slane %v144_v24, %v1125_v14  ;;  %v244_v39 = vrot.slane %v237_v34, %v1125_v14  ;;  %v519_v52 = vcombine.low %v511_v49, %v518_v50  ;;  %v1028_v58 = vld [vmem:[%s1277_s0 + $0x16] ss:$8 sps:$4 sm:$0x11]   ;;  %v605_v59 = vrot.slane %v1027_v57, %v1125_v14  ;;  %v1029_v61 = vld [vmem:[%s1277_s0 + $0x7] ss:$8 sps:$4 sm:$0x11]  }
   0xd   :  { %936 = vmatmul.mubr.msk.bf16.vlgmr.msra.gmra.mrb[0].mxu0 %vm80_vm1, %v67_v29  ;;  %v338_v40 = vrot.slane %v331_v36, %v1125_v14  ;;  %v432_v55 = vrot.slane %v425_v48, %v1125_v14  ;;  %v612_v60 = vrot.slane %v1028_v58, %v1125_v14  ;;  %v1030_v62 = vld [vmem:[%s1277_s0 + $0x17] ss:$8 sps:$4 sm:$0x11]  }
   0xe   :  { %944 = vmatmul.mubr.msk.bf16.vlgmr.msra.gmra.mrb[0].mxu1 %vm80_vm1, %v151_v30  ;;  %948 = vmatpush3.bf16.msra.mxu0 %v1007_v19  ;;  %v526_v56 = vrot.slane %v519_v52, %v1125_v14 }
   0xf   :  { %956 = vmatpush3.bf16.msra.mxu1 %v1008_v20  ;;  %949 = vmatprep.subr.bf16.mxu0 %v1057_v1 }
  0x10   :  { %957 = vmatprep.subr.bf16.mxu1 %v1057_v1  ;;  %951 = vmatprep.mubr.msk.bf16.mxu0 %vm1058_vm0, %v1057_v1 }
  0x11   :  { %959 = vmatprep.mubr.msk.bf16.mxu1 %vm1058_vm0, %v1057_v1 }
  0x12   :  { %950 = vmatpush3.bf16.msra.mxu0 %v1009_v33 }
  0x13   :  { %958 = vmatpush3.bf16.msra.mxu1 %v1010_v35  ;;  %963 = vmatprep.subr.bf16.mxu0 %v1057_v1 }
  0x14   :  { %971 = vmatprep.subr.bf16.mxu1 %v1057_v1 }
  0x15   :  { %952 = vmatmul.mubr.msk.bf16.vlgmr.msra.gmra.mrb[4].mxu0 %vm80_vm1, %v244_v39 }
  0x16   :  { %960 = vmatmul.mubr.msk.bf16.vlgmr.msra.gmra.mrb[4].mxu1 %vm80_vm1, %v338_v40  ;;  %964 = vmatpush3.bf16.msra.mxu0 %v1015_v37 }
  0x17   :  { %972 = vmatpush3.bf16.msra.mxu1 %v1016_v41  ;;  %965 = vmatprep.subr.bf16.mxu0 %v1057_v1 }
  0x18   :  { %973 = vmatprep.subr.bf16.mxu1 %v1057_v1  ;;  %967 = vmatprep.mubr.msk.bf16.mxu0 %vm1058_vm0, %v1057_v1 }
  0x19   :  { %975 = vmatprep.mubr.msk.bf16.mxu1 %vm1058_vm0, %v1057_v1 }
  0x1a   :  { %966 = vmatpush3.bf16.msra.mxu0 %v1017_v47 }
  0x1b   :  { %974 = vmatpush3.bf16.msra.mxu1 %v1018_v51  ;;  %979 = vmatprep.subr.bf16.mxu0 %v1057_v1 }
  0x1c   :  { %987 = vmatprep.subr.bf16.mxu1 %v1057_v1 }
  0x1d   :  { %10 = vsyncpa [#allocation3], 0  ;;  %968 = vmatmul.mubr.msk.bf16.vlgmr.msra.gmra.mrb[8].mxu0 %vm80_vm1, %v432_v55  ;;  %v613_v63 = vcombine.low %v605_v59, %v612_v60  ;;  %v699_v0 = vrot.slane %v1029_v61, %v1125_v14  ;;  %v706_v2 = vrot.slane %v1030_v62, %v1125_v14  ;;  %v1025_v3 = vld [vmem:[%s1278_s1 + $0x68] sm:$0xff]   ;;  %v1026_v4 = vld [vmem:[%s1278_s1 + $0x78] sm:$0xff]   ;;  %s1060_s10 = smov [#allocation2]  }
  0x1e   :  { %976 = vmatmul.mubr.msk.bf16.vlgmr.msra.gmra.mrb[8].mxu1 %vm80_vm1, %v526_v56  ;;  %980 = vmatpush3.bf16.msra.mxu0 %v1023_v53  ;;  %v904_v43 = vld [vmem:[%s1279_s2] ss:$0 sm:$0xff]  ;;  %s816_s11 = sshll.u32 %s1060_s10, 4  ;;  %s817_s11 = int_to_ptr.vmem [resolvable:$true] %s816_s11 }
  0x1f   :  { %988 = vmatpush3.bf16.msra.mxu1 %v1024_v54  ;;  %981 = vmatprep.subr.bf16.mxu0 %v1057_v1  ;;  %v707_v5 = vcombine.low %v699_v0, %v706_v2  ;;  %v620_v6 = vrot.slane %v613_v63, %v1125_v14  ;;  %v905_v58 = vld [vmem:[%s1280_s3] ss:$0 sm:$0xff]  ;;  %s1033_s12 = scalar_lea.vmem %s817_s11, 128  ;;  %p1038_p1 = scmp.lt.s32.totalorder %s817_s11, %s817_s11 }
  0x20   :  { %989 = vmatprep.subr.bf16.mxu1 %v1057_v1  ;;  %983 = vmatprep.mubr.msk.bf16.mxu0 %vm1058_vm0, %v1057_v1  ;;  %v906_v60 = vld [vmem:[%s1281_s4] ss:$0 sm:$0xff]  ;;  %p1034_p0 = scmp.ne.s32.totalorder %s817_s11, %s1033_s12  ;;  %p1039_p2 = scmp.lt.s32.totalorder %s1033_s12, %s1033_s12 }
  0x21   :  { %991 = vmatprep.mubr.msk.bf16.mxu1 %vm1058_vm0, %v1057_v1  ;;  %v714_v7 = vrot.slane %v707_v5, %v1125_v14 }
  0x22   :  { %982 = vmatpush3.bf16.msra.mxu0 %v1025_v3  ;;  %p1040_p3 = por %p1039_p2, %p1038_p1 }
  0x23   :  { %990 = vmatpush3.bf16.msra.mxu1 %v1026_v4 }
  0x24   :  { %p1041_p4 = pnand %p1040_p3, %p1034_p0 }
  0x25   :  { %984 = vmatmul.mubr.msk.bf16.vlgmr.msra.gmra.mrb[12].mxu0 %vm80_vm1, %v620_v6 }
  0x26   :  { %992 = vmatmul.mubr.msk.bf16.vlgmr.msra.gmra.mrb[12].mxu1 %vm80_vm1, %v714_v7 }
  0xe0   :  { %v118_v8 = vpop.f32.mrb[0].mxu0 }
  0xe1   :  { %v201_v9 = vpop.f32.mrb[0].mxu1  ;;  %v937_v11 = vpop.f32.mrb[1].mxu0 }
  0xe2   :  { %v202_v10 = vadd.f32 %v201_v9, %v118_v8  ;;  %v945_v12 = vpop.f32.mrb[1].mxu1  ;;  %v121_v13 = vpop.f32.mrb[2].mxu0 }
  0xe3   :  { %v204_v15 = vpop.f32.mrb[2].mxu1  ;;  %v938_v16 = vpop.f32.mrb[3].mxu0 }
  0xe4   :  { %v946_v17 = vpop.f32.mrb[3].mxu1 }
  0xe8   :  { %v294_v1 = vpop.f32.mrb[4].mxu0 }
  0xe9   :  { %v388_v18 = vpop.f32.mrb[4].mxu1  ;;  %v300_v19 = vadd.f32 %v294_v1, %v202_v10  ;;  %v953_v20 = vpop.f32.mrb[5].mxu0 }
  0xea   :  { %v961_v14 = vpop.f32.mrb[5].mxu1  ;;  %v297_v21 = vpop.f32.mrb[6].mxu0 }
  0xeb   :  { %v391_v22 = vpop.f32.mrb[6].mxu1  ;;  %v394_v23 = vadd.f32 %v388_v18, %v300_v19  ;;  %v954_v24 = vpop.f32.mrb[7].mxu0 }
  0xec   :  { %v962_v25 = vpop.f32.mrb[7].mxu1 }
  0xf0   :  { %v482_v26 = vpop.f32.mrb[8].mxu0 }
  0xf1   :  { %v576_v27 = vpop.f32.mrb[8].mxu1  ;;  %v488_v28 = vadd.f32 %v482_v26, %v394_v23  ;;  %v969_v29 = vpop.f32.mrb[9].mxu0 }
  0xf2   :  { %v977_v30 = vpop.f32.mrb[9].mxu1  ;;  %v485_v31 = vpop.f32.mrb[10].mxu0 }
  0xf3   :  { %v579_v32 = vpop.f32.mrb[10].mxu1  ;;  %v582_v33 = vadd.f32 %v576_v27, %v488_v28  ;;  %v970_v34 = vpop.f32.mrb[11].mxu0 }
  0xf4   :  { %v978_v35 = vpop.f32.mrb[11].mxu1 }
  0xf8   :  { %v670_v36 = vpop.f32.mrb[12].mxu0 }
  0xf9   :  { %v764_v37 = vpop.f32.mrb[12].mxu1  ;;  %v676_v38 = vadd.f32 %v670_v36, %v582_v33  ;;  %v985_v39 = vpop.f32.mrb[13].mxu0 }
  0xfa   :  { %v993_v40 = vpop.f32.mrb[13].mxu1  ;;  %v673_v41 = vpop.f32.mrb[14].mxu0 }
  0xfb   :  { %v767_v42 = vpop.f32.mrb[14].mxu1  ;;  %v770_v44 = vadd.f32 %v764_v37, %v676_v38  ;;  %v986_v45 = vpop.f32.mrb[15].mxu0 }
  0xfc   :  { %v994_v46 = vpop.f32.mrb[15].mxu1 }
  0xfd   :  { %v778_v47 = vadd.f32 %v904_v43, %v770_v44 }
  0xff   :  { %v779_v48 = vsel %vm80_vm1, %v778_v47, 0.0 }
 0x100   :  { %780 = vadd.xlane.f32.xlu0 %v779_v48 }
 0x18d   :  { %v781_v49 = vpop.xlane.xlu0 %780 }
 0x18e   :  { %v783_v50 = vmul.f32 0.03125, %v781_v49 }
 0x190   :  { %v784_v51 = vsub.f32 %v778_v47, %v783_v50 }
 0x192   :  { %v785_v52 = vmul.f32 %v784_v51, %v784_v51 }
 0x194   :  { %v786_v53 = vsel %vm80_vm1, %v785_v52, 0.0 }
 0x195   :  { %787 = vadd.xlane.f32.xlu0 %v786_v53 }
 0x222   :  { %v788_v54 = vpop.xlane.xlu0 %787 }
 0x223   :  { %v789_v55 = vmul.f32 0.03125, %v788_v54 }
 0x225   :  { %v790_v56 = vadd.f32 1e-05, %v789_v55 }
 0x227   :  { %1031 = vrsqrt.f32 %v790_v56 }
 0x231   :  { %v1032_v57 = vpop.eup %1031 }
 0x232   :  { %v792_v59 = vmul.f32 %v1032_v57, %v784_v51 }
 0x234   :  { %v800_v61 = vmul.f32 %v905_v58, %v792_v59 }
 0x236   :  { %v808_v62 = vadd.f32 %v906_v60, %v800_v61 }
 0x238   :  { %809 = vst.msk [vmem:[#allocation2] sm:$0xff] %vm80_vm1, %v808_v62 }
 0x239   :  { %1044 = shalt.err (!%p1041_p4)
}
 0x23a   :  { %s1045_s14 = scalar_lea.hbm %s1282_s5, 128 }
 0x23b   :  { %p1046_p5 = scmp.ne.s32.totalorder %s1282_s5, %s1045_s14  ;;  %p1049_p6 = scmp.lt.u32.totalorder %s1045_s14, %s1282_s5 }
 0x23d   :  { %p1051_p7 = pnand %p1049_p6, %p1046_p5 }
 0x23f   :  { %1054 = shalt.err (!%p1051_p7)
}
 0x240   :  { %819 = dma.vmem_to_hbm [thread:$0]  %s817_s11, 128, %s1282_s5, [#allocation3]  }
 0x241   :  { %1055 = dma.done.wait [#allocation3], 128  }
 0x242   :  { %1056 = vsyncadd [#allocation3], 4294967168 }
 0x243   :  { %823 = vsyncpa [#allocation3], 1 }

</bundles_post_ra>
